<compile_context>
chip_gen: v6e
topology: v6e:2x2x1
jax: 0.10.0
libtpu: 0.0.40
codegen_flags: <defaults>
</compile_context>

<pallas_src>
import functools

import jax
import jax.numpy as jnp
from jax.experimental import pallas as pl
from jax.experimental.pallas import tpu as pltpu


# ----------------------------------------------------------------------------- constants
_LANE_CANDIDATES = (512, 256, 128)        # lane-dense widths (multiples of 128)
_FAST_PATH_BYTES = 4 * 1024 * 1024        # whole-tensor fused path (f32 footprint)
_CACHED_SLAB_BYTES = 16 * 1024 * 1024     # single-HBM-read cached-slab path (f32 slab)
_CACHED_TILE_BYTES = 2 * 1024 * 1024      # per-tile f32 bytes, cached path
_TWO_PASS_TILE_BYTES = 4 * 1024 * 1024    # per-tile f32 bytes, streaming path
_VMEM_LIMIT = 48 * 1024 * 1024            # explicit scoped-VMEM limit (safe on v5e/v6e/v7x)


def _round_up(v, m):
    return (v + m - 1) // m * m


def _cdiv(a, b):
    return -(-a // b)


def _inv_denom(n):
    # torch.var() is unbiased; a single element gives NaN (0/0) - keep that parity.
    return 1.0 / (n - 1) if n > 1 else float("nan")


def _pick_tile_rows(rows, lanes, target_bytes):
    """Largest multiple-of-8 row tile <= target; prefer one that divides `rows` exactly."""
    cap = max(8, (target_bytes // (lanes * 4)) // 8 * 8)
    tile = min(cap, _round_up(rows, 8))
    if rows % tile:
        for cand in range(tile - 8, max(8, tile // 4) - 1, -8):
            if rows % cand == 0:
                return cand
    return tile


# ----------------------------------------------------------------------------- kernels
def _whole_tensor_kernel(x_ref, o_ref, *, n, inv_n, inv_denom):
    """Fused reduce + normalize for tensors that fit in VMEM (single block, no grid)."""
    x = x_ref[...]
    if x.dtype != jnp.float32:
        x = x.astype(jnp.float32)
    total = jnp.sum(x, keepdims=True)
    total_sq = jnp.sum(x * x, keepdims=True)
    mean = total * inv_n
    var = (total_sq - n * (mean * mean)) * inv_denom      # unbiased (ddof=1)
    inv_std = jax.lax.rsqrt(var)                          # EUP
    shift = mean * inv_std
    o_ref[...] = (x * inv_std - shift).astype(o_ref.dtype)


def _cached_slab_kernel(x_ref, o_ref, slab_ref, psum_ref, psq_ref, istd_ref, shift_ref,
                        *, rows, tile_rows, n, inv_n, inv_denom, ragged):
    """grid = (2, num_tiles): pass 0 caches tiles in VMEM + reduces, pass 1 normalizes."""
    p = pl.program_id(0)          # 0 = load + reduce, 1 = normalize from the cached slab
    i = pl.program_id(1)
    num_tiles = pl.num_programs(1)
    row0 = pl.multiple_of(i * tile_rows, 8)

    @pl.when((p == 0) & (i == 0))
    def _init():
        psum_ref[...] = jnp.zeros_like(psum_ref)
        psq_ref[...] = jnp.zeros_like(psq_ref)

    @pl.when(p == 0)
    def _reduce_and_cache():
        x = x_ref[...]
        if x.dtype != jnp.float32:
            x = x.astype(jnp.float32)
        if ragged:  # zero out rows past the true extent (last, partial tile)
            gid = jax.lax.broadcasted_iota(jnp.int32, x.shape, 0) + i * tile_rows
            x = jnp.where(gid < rows, x, 0.0)
        slab_ref[pl.ds(row0, tile_rows), :] = x
        # per-lane partial sums only (VPU adds); cross-lane reduce deferred to the end
        psum_ref[...] += jnp.sum(x, axis=0, keepdims=True)
        psq_ref[...] += jnp.sum(x * x, axis=0, keepdims=True)

        @pl.when(i == num_tiles - 1)
        def _finalize_stats():
            total = jnp.sum(psum_ref[...], keepdims=True)       # (1, 1)
            total_sq = jnp.sum(psq_ref[...], keepdims=True)     # (1, 1)
            mean = total * inv_n
            var = (total_sq - n * (mean * mean)) * inv_denom
            istd = jax.lax.rsqrt(var)
            istd_ref[...] = istd
            shift_ref[...] = mean * istd

    @pl.when(p == 1)
    def _normalize():
        x = slab_ref[pl.ds(row0, tile_rows), :]
        o_ref[...] = (x * istd_ref[...] - shift_ref[...]).astype(o_ref.dtype)


def _reduce_stats_kernel(x_ref, istd_ref, shift_ref, psum_ref, psq_ref,
                         *, rows, tile_rows, n, inv_n, inv_denom, ragged):
    """Streaming pass 1: per-lane partials; stats (inv_std, mean*inv_std) at the last tile."""
    i = pl.program_id(0)

    @pl.when(i == 0)
    def _init():
        psum_ref[...] = jnp.zeros_like(psum_ref)
        psq_ref[...] = jnp.zeros_like(psq_ref)

    x = x_ref[...]
    if x.dtype != jnp.float32:
        x = x.astype(jnp.float32)
    if ragged:
        gid = jax.lax.broadcasted_iota(jnp.int32, x.shape, 0) + i * tile_rows
        x = jnp.where(gid < rows, x, 0.0)
    psum_ref[...] += jnp.sum(x, axis=0, keepdims=True)
    psq_ref[...] += jnp.sum(x * x, axis=0, keepdims=True)

    @pl.when(i == pl.num_programs(0) - 1)
    def _finalize_stats():
        total = jnp.sum(psum_ref[...], keepdims=True)
        total_sq = jnp.sum(psq_ref[...], keepdims=True)
        mean = total * inv_n
        var = (total_sq - n * (mean * mean)) * inv_denom
        istd = jax.lax.rsqrt(var)
        istd_ref[...] = istd
        shift_ref[...] = mean * istd


def _normalize_kernel(istd_ref, shift_ref, x_ref, o_ref):
    """Streaming pass 2: out = x * inv_std - shift, scalars read from SMEM."""
    istd = istd_ref[0, 0]
    shift = shift_ref[0, 0]
    x = x_ref[...]
    if x.dtype != jnp.float32:
        x = x.astype(jnp.float32)
    o_ref[...] = (x * istd - shift).astype(o_ref.dtype)


# ----------------------------------------------------------------------------- runners
def _run_whole_tensor(view, n):
    kern = functools.partial(_whole_tensor_kernel, n=float(n), inv_n=1.0 / n,
                             inv_denom=_inv_denom(n))
    return pl.pallas_call(
        kern,
        out_shape=jax.ShapeDtypeStruct(view.shape, view.dtype),
        compiler_params=pltpu.CompilerParams(vmem_limit_bytes=_VMEM_LIMIT),
    )(view)


def _run_cached(x2d, n, tile_rows):
    rows, lanes = x2d.shape
    num_tiles = _cdiv(rows, tile_rows)
    slab_rows = num_tiles * tile_rows
    ragged = (rows % tile_rows) != 0
    itemsize = jnp.dtype(x2d.dtype).itemsize
    kern = functools.partial(_cached_slab_kernel, rows=rows, tile_rows=tile_rows,
                             n=float(n), inv_n=1.0 / n, inv_denom=_inv_denom(n),
                             ragged=ragged)
    last = num_tiles - 1
    return pl.pallas_call(
        kern,
        out_shape=jax.ShapeDtypeStruct((rows, lanes), x2d.dtype),
        grid=(2, num_tiles),
        # pass 0: walk the tiles; pass 1: park on the last tile (no extra input DMAs)
        in_specs=[pl.BlockSpec((tile_rows, lanes),
                               lambda p, i, _last=last: (i * (1 - p) + _last * p, 0))],
        # pass 0: park on block 0 (never flushed with garbage); pass 1: walk the tiles
        out_specs=pl.BlockSpec((tile_rows, lanes), lambda p, i: (i * p, 0)),
        scratch_shapes=[
            pltpu.VMEM((slab_rows, lanes), jnp.float32),   # cached f32 slab
            pltpu.VMEM((1, lanes), jnp.float32),           # per-lane partial sum
            pltpu.VMEM((1, lanes), jnp.float32),           # per-lane partial sum of squares
            pltpu.VMEM((1, 1), jnp.float32),               # inv_std
            pltpu.VMEM((1, 1), jnp.float32),               # mean * inv_std
        ],
        compiler_params=pltpu.CompilerParams(
            dimension_semantics=("arbitrary", "arbitrary"),
            vmem_limit_bytes=_VMEM_LIMIT),
        cost_estimate=pl.CostEstimate(
            flops=5 * rows * lanes, transcendentals=1,
            bytes_accessed=2 * rows * lanes * itemsize),
    )(x2d)


def _run_two_pass(x2d, n, tile_rows):
    rows, lanes = x2d.shape
    num_tiles = _cdiv(rows, tile_rows)
    ragged = (rows % tile_rows) != 0
    itemsize = jnp.dtype(x2d.dtype).itemsize

    reduce_kern = functools.partial(_reduce_stats_kernel, rows=rows, tile_rows=tile_rows,
                                    n=float(n), inv_n=1.0 / n, inv_denom=_inv_denom(n),
                                    ragged=ragged)
    istd, shift = pl.pallas_call(
        reduce_kern,
        out_shape=(jax.ShapeDtypeStruct((1, 1), jnp.float32),
                   jax.ShapeDtypeStruct((1, 1), jnp.float32)),
        grid=(num_tiles,),
        in_specs=[pl.BlockSpec((tile_rows, lanes), lambda i: (i, 0))],
        out_specs=(pl.BlockSpec((1, 1), lambda i: (0, 0)),
                   pl.BlockSpec((1, 1), lambda i: (0, 0))),
        scratch_shapes=[pltpu.VMEM((1, lanes), jnp.float32),
                        pltpu.VMEM((1, lanes), jnp.float32)],
        compiler_params=pltpu.CompilerParams(
            dimension_semantics=("arbitrary",), vmem_limit_bytes=_VMEM_LIMIT),
        cost_estimate=pl.CostEstimate(
            flops=3 * rows * lanes, transcendentals=1,
            bytes_accessed=rows * lanes * itemsize),
    )(x2d)

    return pl.pallas_call(
        _normalize_kernel,
        out_shape=jax.ShapeDtypeStruct((rows, lanes), x2d.dtype),
        grid=(num_tiles,),
        in_specs=[
            pl.BlockSpec(memory_space=pltpu.MemorySpace.SMEM),   # inv_std
            pl.BlockSpec(memory_space=pltpu.MemorySpace.SMEM),   # mean * inv_std
            pl.BlockSpec((tile_rows, lanes), lambda i: (i, 0)),  # x tile
        ],
        out_specs=pl.BlockSpec((tile_rows, lanes), lambda i: (i, 0)),
        compiler_params=pltpu.CompilerParams(
            dimension_semantics=("parallel",), vmem_limit_bytes=_VMEM_LIMIT),
        cost_estimate=pl.CostEstimate(
            flops=2 * rows * lanes, transcendentals=0,
            bytes_accessed=2 * rows * lanes * itemsize),
    )(istd, shift, x2d)


# ----------------------------------------------------------------------------- wrapper
def my_batch_normalization_layer(x, *, force_path=None, force_tile_rows=None):
    """Pallas equivalent of (x - x.mean()) / sqrt(x.var())  (torch unbiased var)."""
    orig_shape = x.shape
    n = int(x.size)
    if n == 0:
        return x

    flat = x.reshape(-1)  # free (metadata-only) reshape
    lanes = next((c for c in _LANE_CANDIDATES if n % c == 0), 0)

    if lanes:
        rows = n // lanes
        view2d = flat.reshape(rows, lanes)            # free, lane-dense, no padding
        fast_view = view2d
        fp32_footprint = _round_up(rows, 8) * lanes * 4
    else:
        view2d = None
        fast_view = x if x.ndim >= 2 else flat.reshape(1, n)
        s = fast_view.shape
        lead = 1
        for d in s[:-2]:
            lead *= d
        fp32_footprint = lead * _round_up(s[-2], 8) * _round_up(s[-1], 128) * 4

    # ---- path 1: fused whole-tensor kernel (fits in VMEM) -----------------------------
    if force_path == "fast" or (force_path is None and fp32_footprint <= _FAST_PATH_BYTES):
        return _run_whole_tensor(fast_view, n).reshape(orig_shape)

    # ---- streaming paths need a lane-dense 2-D slab ------------------------------------
    sliced = False
    if view2d is None:
        # TODO(synk): rare case (large tensor with n % 128 != 0): fall back to a padded
        # slab, costing one extra HBM copy each way. Zeros do not perturb sum/sumsq since
        # the stats divide by the true n.
        pad = (-n) % 512
        flat = jnp.pad(flat, (0, pad))
        lanes = 512
        rows = (n + pad) // lanes
        view2d = flat.reshape(rows, lanes)
        sliced = True
    rows, lanes = view2d.shape

    slab_bytes = _round_up(rows, 8) * lanes * 4
    if force_path == "cached" or (force_path is None and slab_bytes <= _CACHED_SLAB_BYTES):
        tile_rows = (force_tile_rows if force_tile_rows is not None
                     else _pick_tile_rows(rows, lanes, _CACHED_TILE_BYTES))
        out2d = _run_cached(view2d, n, tile_rows)
    else:
        tile_rows = (force_tile_rows if force_tile_rows is not None
                     else _pick_tile_rows(rows, lanes, _TWO_PASS_TILE_BYTES))
        out2d = _run_two_pass(view2d, n, tile_rows)

    out_flat = out2d.reshape(-1)
    if sliced:
        out_flat = out_flat[:n]
    return out_flat.reshape(orig_shape)


# ----------------------------------------------------------------------------- test
if __name__ == "__main__":
    key = jax.random.PRNGKey(0)

    def _ref(v):
        return (v - jnp.mean(v)) / jnp.sqrt(jnp.var(v, ddof=1))

    # 1) small NCHW-like input (the module's typical use) -> fused whole-tensor path
    x1 = jax.random.normal(key, (2, 4, 16, 16), dtype=jnp.float32)
    o1 = my_batch_normalization_layer(x1)
    jax.block_until_ready(o1)
    assert o1.shape == x1.shape and o1.dtype == x1.dtype
    assert jnp.allclose(o1, _ref(x1), atol=2e-5, rtol=2e-5)

    # 2) exercise the single-HBM-read cached-slab path (grid=(2, tiles), 4 even tiles)
    x2 = jax.random.normal(jax.random.fold_in(key, 1), (4, 4, 32, 32), dtype=jnp.float32)
    o2 = my_batch_normalization_layer(x2, force_path="cached", force_tile_rows=8)
    jax.block_until_ready(o2)
    assert jnp.allclose(o2, _ref(x2), atol=2e-5, rtol=2e-5)

    # 3) exercise the streaming two-pass path (reduce + "parallel" normalize, 2 even tiles)
    x3 = jax.random.normal(jax.random.fold_in(key, 2), (2, 4, 32, 32), dtype=jnp.float32)
    o3 = my_batch_normalization_layer(x3, force_path="two_pass", force_tile_rows=8)
    jax.block_until_ready(o3)
    assert jnp.allclose(o3, _ref(x3), atol=2e-5, rtol=2e-5)

    print("KERNEL_OK")
</pallas_src>

<mosaic_0001>
module attributes {stable_mosaic.version = 11 : i64} {
  func.func @_whole_tensor_kernel(%arg0: memref<4x512xf32, #tpu.memory_space<vmem>>, %arg1: memref<4x512xf32, #tpu.memory_space<vmem>>) attributes {dimension_semantics = [], scalar_prefetch = 0 : i64, scratch_operands = 0 : i64, tpu.core_type = #tpu.core_type<tc>} {
    %c0 = arith.constant 0 : index
    %c0_0 = arith.constant 0 : index
    %0 = vector.load %arg0[%c0, %c0_0] : memref<4x512xf32, #tpu.memory_space<vmem>>, vector<4x512xf32>
    %1 = vector.shape_cast %0 : vector<4x512xf32> to vector<1x4x512xf32>
    %cst = arith.constant dense<0.000000e+00> : vector<1xf32>
    %2 = vector.multi_reduction <add>, %1, %cst [1, 2] : vector<1x4x512xf32> to vector<1xf32>
    %3 = vector.shape_cast %2 : vector<1xf32> to vector<1x1x1xf32>
    %4 = vector.extract %3[0, 0, 0] : f32 from vector<1x1x1xf32>
    %5 = vector.broadcast %4 : f32 to vector<1x1xf32>
    %6 = arith.mulf %0, %0 : vector<4x512xf32>
    %7 = vector.shape_cast %6 : vector<4x512xf32> to vector<1x4x512xf32>
    %cst_1 = arith.constant dense<0.000000e+00> : vector<1xf32>
    %8 = vector.multi_reduction <add>, %7, %cst_1 [1, 2] : vector<1x4x512xf32> to vector<1xf32>
    %9 = vector.shape_cast %8 : vector<1xf32> to vector<1x1x1xf32>
    %10 = vector.extract %9[0, 0, 0] : f32 from vector<1x1x1xf32>
    %11 = vector.broadcast %10 : f32 to vector<1x1xf32>
    %cst_2 = arith.constant 4.8828125E-4 : f32
    %12 = vector.broadcast %cst_2 : f32 to vector<1x1xf32>
    %13 = arith.mulf %5, %12 : vector<1x1xf32>
    %14 = arith.mulf %13, %13 : vector<1x1xf32>
    %cst_3 = arith.constant 2.048000e+03 : f32
    %15 = vector.broadcast %cst_3 : f32 to vector<1x1xf32>
    %16 = arith.mulf %15, %14 : vector<1x1xf32>
    %17 = arith.subf %11, %16 : vector<1x1xf32>
    %cst_4 = arith.constant 4.88519785E-4 : f32
    %18 = vector.broadcast %cst_4 : f32 to vector<1x1xf32>
    %19 = arith.mulf %17, %18 : vector<1x1xf32>
    %20 = math.rsqrt %19 : vector<1x1xf32>
    %21 = arith.mulf %13, %20 : vector<1x1xf32>
    %22 = vector.broadcast %20 : vector<1x1xf32> to vector<4x512xf32>
    %23 = arith.mulf %0, %22 : vector<4x512xf32>
    %24 = vector.broadcast %21 : vector<1x1xf32> to vector<4x512xf32>
    %25 = arith.subf %23, %24 : vector<4x512xf32>
    %c0_5 = arith.constant 0 : index
    %c0_6 = arith.constant 0 : index
    %26 = vector.load %arg1[%c0_5, %c0_6] : memref<4x512xf32, #tpu.memory_space<vmem>>, vector<4x512xf32>
    tpu.vector_store %arg1[%c0_5, %c0_6], %25 {strides = array<i32>} : memref<4x512xf32, #tpu.memory_space<vmem>>, vector<4x512xf32>,
    return
  }
}

</mosaic_0001>

<bundles_post_ra>
// kernel: tpu_custom_call.1
= control target key start
LH: loop header
LB: loop body
LE: loop exit
PB: predicated region body
PF: predicated region fallthrough
CT: control target
= control target key end

     0   :  { %6 = vsyncpa [#allocation3], 0  ;;  %s180_s0 = inlined_call_operand.hbm [shape: f32[4,512], index: 0, kind: input, shape index: {}]   ;;  %s181_s1 = inlined_call_operand.hbm [shape: f32[4,512], index: 1, kind: output, shape index: {}]  }
   0x1   :  { %7 = vsyncpa [#allocation4], 0  ;;  %s154_s6 = smov [#allocation2]  }
   0x2   :  { %s14_s7 = sshll.u32 %s154_s6, 4  ;;  %s15_s7 = int_to_ptr.vmem [resolvable:$true] %s14_s7 }
   0x3   :  { %s118_s8 = scalar_lea.vmem %s15_s7, 256  ;;  %p123_p1 = scmp.lt.s32.totalorder %s15_s7, %s15_s7 }
   0x4   :  { %p119_p0 = scmp.ne.s32.totalorder %s15_s7, %s118_s8  ;;  %p124_p2 = scmp.lt.s32.totalorder %s118_s8, %s118_s8 }
   0x6   :  { %p125_p3 = por %p124_p2, %p123_p1 }
   0x8   :  { %p126_p4 = pnand %p125_p3, %p119_p0 }
   0xa   :  { %129 = shalt.err (!%p126_p4)
}
   0xb   :  { %17 = dma.hbm_to_vmem [thread:$0]  %s180_s0, 256, %s15_s7, [#allocation3]  }
   0xc   :  { %150 = dma.done.wait [#allocation3], 256  }
   0xd   :  { %151 = vsyncadd [#allocation3], 4294967040  ;;  %vm29_vm0 = vcmask 1043456   ;;  %v21_v0 = vld [vmem:[#allocation2] sm:$0xff]  ;;  %v22_v1 = vld [vmem:[#allocation2 + $0x8] sm:$0xff]  ;;  %s155_s12 = smov [#allocation5]  }
   0xe   :  { %v25_v2 = vcombine.high %v21_v0, %v21_v0  ;;  %v26_v3 = vcombine.high %v22_v1, %v22_v1  ;;  %v30_v4 = vsel %vm29_vm0, %v21_v0, 0.0  ;;  %v47_v5 = vmul.f32 %v21_v0, %v21_v0  ;;  %s91_s13 = sshll.u32 %s155_s12, 4  ;;  %s92_s13 = int_to_ptr.vmem [resolvable:$true] %s91_s13 }
   0xf   :  { %v48_v6 = vmul.f32 %v22_v1, %v22_v1  ;;  %v33_v8 = vsel %vm29_vm0, %v22_v1, 0.0  ;;  %s130_s14 = scalar_lea.vmem %s92_s13, 256  ;;  %p135_p6 = scmp.lt.s32.totalorder %s92_s13, %s92_s13 }
  0x10   :  { %v31_v7 = vsel %vm29_vm0, %v25_v2, 0.0  ;;  %v51_v10 = vcombine.high %v47_v5, %v47_v5  ;;  %v55_v12 = vsel %vm29_vm0, %v47_v5, 0.0  ;;  %v35_v13 = vsel %vm29_vm0, %v26_v3, 0.0  ;;  %p131_p5 = scmp.ne.s32.totalorder %s92_s13, %s130_s14  ;;  %p136_p7 = scmp.lt.s32.totalorder %s130_s14, %s130_s14 }
  0x11   :  { %v32_v9 = vadd.f32 %v31_v7, %v30_v4  ;;  %v52_v11 = vcombine.high %v48_v6, %v48_v6  ;;  %v58_v16 = vsel %vm29_vm0, %v48_v6, 0.0 }
  0x12   :  { %v56_v15 = vsel %vm29_vm0, %v51_v10, 0.0  ;;  %p137_p8 = por %p136_p7, %p135_p6 }
  0x13   :  { %v34_v14 = vadd.f32 %v33_v8, %v32_v9  ;;  %v57_v17 = vadd.f32 %v56_v15, %v55_v12  ;;  %v60_v19 = vsel %vm29_vm0, %v52_v11, 0.0 }
  0x14   :  { %p138_p9 = pnand %p137_p8, %p131_p5 }
  0x15   :  { %v36_v18 = vadd.f32 %v35_v13, %v34_v14  ;;  %v59_v20 = vadd.f32 %v58_v16, %v57_v17 }
  0x17   :  { %37 = vadd.xlane.f32.xlu0 %v36_v18  ;;  %v61_v21 = vadd.f32 %v60_v19, %v59_v20 }
  0x1b   :  { %62 = vadd.xlane.f32.xlu0 %v61_v21 }
  0xa0   :  { %v38_v22 = vpop.xlane.xlu0 %37 }
  0xa1   :  { %v39_v23 = vrot.slane %v38_v22, 4 }
  0xa3   :  { %v40_v24 = vadd.f32 %v39_v23, %v38_v22 }
  0xa4   :  { %v63_v25 = vpop.xlane.xlu0 %62 }
  0xa5   :  { %v41_v26 = vrot.slane %v40_v24, 2  ;;  %v64_v27 = vrot.slane %v63_v25, 4 }
  0xa7   :  { %v65_v28 = vadd.f32 %v64_v27, %v63_v25  ;;  %v42_v29 = vadd.f32 %v41_v26, %v40_v24 }
  0xa9   :  { %v66_v30 = vrot.slane %v65_v28, 2  ;;  %v43_v31 = vrot.slane %v42_v29, 1 }
  0xab   :  { %v67_v32 = vadd.f32 %v66_v30, %v65_v28  ;;  %v44_v33 = vadd.f32 %v43_v31, %v42_v29 }
  0xad   :  { %100 = vpush %v44_v33  ;;  %v68_v34 = vrot.slane %v67_v32, 1 }
  0xaf   :  { %v69_v35 = vadd.f32 %v68_v34, %v67_v32 }
  0xb1   :  { %102 = vpush %v69_v35 }
  0xde   :  { %s101_s0 = spop %100 }
  0xdf   :  { %v46_v36 = vstv %s101_s0 }
  0xe0   :  { %v72_v37 = vmul.f32 0.00048828125, %v46_v36 }
  0xe2   :  { %v73_v38 = vmul.f32 %v72_v37, %v72_v37  ;;  %s103_s11 = spop %102 }
  0xe3   :  { %v71_v40 = vstv %s103_s11 }
  0xe4   :  { %v74_v39 = vmul.f32 2048.0, %v73_v38 }
  0xe6   :  { %v75_v41 = vsub.f32 %v71_v40, %v74_v39 }
  0xe8   :  { %v76_v42 = vmul.f32 0.0004885198, %v75_v41 }
  0xea   :  { %108 = vrsqrt.f32 %v76_v42 }
  0xf7   :  { %v109_v43 = vpop.eup %108 }
  0xf8   :  { %v78_v44 = vmul.f32 %v109_v43, %v72_v37  ;;  %v79_v45 = vmul.f32 %v109_v43, %v21_v0  ;;  %v80_v46 = vmul.f32 %v109_v43, %v22_v1 }
  0xfa   :  { %v81_v47 = vsub.f32 %v79_v45, %v78_v44  ;;  %v82_v48 = vsub.f32 %v80_v46, %v78_v44 }
  0xfc   :  { %83 = vst [vmem:[#allocation5] sm:$0xff] %v81_v47  ;;  %84 = vst [vmem:[#allocation5 + $0x8] sm:$0xff] %v82_v48 }
  0xfd   :  { %141 = shalt.err (!%p138_p9)
}
  0xfe   :  { %94 = dma.vmem_to_hbm [thread:$0]  %s92_s13, 256, %s181_s1, [#allocation4]  }
  0xff   :  { %152 = dma.done.wait [#allocation4], 256  }
 0x100   :  { %153 = vsyncadd [#allocation4], 4294967040 }
 0x101   :  { %98 = vsyncpa [#allocation3], 1 }
 0x102   :  { %99 = vsyncpa [#allocation4], 1 }

</bundles_post_ra>
